<compile_context>
chip_gen: v7x
topology: tpu7x:2x2x1
jax: 0.10.0
libtpu: 0.0.40
codegen_flags: <defaults>
</compile_context>

<pallas_src>
import functools

import jax
import jax.numpy as jnp
from jax.experimental import pallas as pl
from jax.experimental.pallas import tpu as pltpu


def _target_block_bytes():
    # ~2 MiB per x tile amortizes the ~0.35 us per-grid-step overhead on
    # v5e/v6e while double-buffered in+out (~8 MiB) stays far below even
    # v5e's 16 MiB default scoped-VMEM limit.  v7x's ~3.2 TB/s HBM wants
    # larger tiles: 4 MiB -> ~16 MiB of buffers, still < 32 MiB scoped.
    try:
        kind = jax.devices()[0].device_kind.lower()
        if "v7" in kind:
            return 4 << 20
    except Exception:
        pass
    return 2 << 20


def _choose_tiles(rows, lanes, itemsize, budget):
    """Row/lane tile sizes for a (rows, lanes) elementwise stream.

    Lane tile first: use the full lane extent whenever a minimum-height tile
    fits the byte budget (long contiguous DMA bursts, wide unmasked stores),
    otherwise the largest multiple of 128 within budget.  The row tile then
    takes the remaining budget, aligned to the dtype's sublane packing
    (8 f32 / 16 bf16 / 32 int8) unless the full dimension is used.
    """
    align = max(8, 32 // itemsize)
    if lanes <= 128 or lanes * align * itemsize <= budget:
        tt = lanes                        # full-dim extent is always legal
    else:
        tt = max(128, ((budget // (align * itemsize)) // 128) * 128)
    row_cap = max(align, budget // (tt * itemsize))
    tr = min(rows, max(align, (row_cap // align) * align))
    return tr, tt


def _affine_drop_path_kernel(s_ref, x_ref, o_ref, *, tr):
    # s_ref: (R_pad, 1) combined per-row scale (float32), resident in VMEM.
    # x_ref, o_ref: (tr, tt) tile of the activation stream.
    ri = pl.program_id(0)
    start = pl.multiple_of(ri * tr, 8)       # tr is 8-aligned whenever grid>1
    s = s_ref[pl.ds(start, tr), :]           # (tr, 1)
    o_ref[...] = (x_ref[...] * s).astype(o_ref.dtype)


def affine_drop_path_pallas(x, channel_scale, drop_prob=0.0, training=False,
                            *, key=None, block_bytes=None):
    """out = drop_path(channel_scale * x, drop_prob, training).

    x: (B, C, T) (or (B, C, *spatial); trailing dims are flattened).
    channel_scale: (1, C, 1) or (C,) learned per-channel scale.
    """
    assert x.ndim >= 3, "expected (B, C, T[, ...]) input"
    orig_shape = x.shape
    B, C = orig_shape[0], orig_shape[1]
    xr = x.reshape(B * C, -1)                # collapse (B, C) into the row axis
    R, T = xr.shape

    keep_prob = 1.0 - drop_prob
    if training and drop_prob > 0.0:
        assert key is not None, "PRNG key required in training mode"
        rand = jax.random.uniform(key, (B,), dtype=jnp.float32)
        # floor(keep_prob + U[0,1)) == Bernoulli(keep_prob); pre-divide by keep.
        sample_scale = jnp.floor(keep_prob + rand) / keep_prob
    else:
        sample_scale = jnp.ones((B,), dtype=jnp.float32)

    # Fold per-channel and per-sample factors into one tiny (B*C, 1) tensor.
    # Kept in float32 (no cast to x.dtype) so the 1e-4 init scale and
    # 1/keep_prob are not quantized for bf16/int8 activations.
    cs = jnp.asarray(channel_scale, dtype=jnp.float32).reshape(1, C)
    combined = (sample_scale[:, None] * cs).reshape(B * C, 1)

    itemsize = jnp.dtype(x.dtype).itemsize
    budget = block_bytes if block_bytes is not None else _target_block_bytes()
    tr, tt = _choose_tiles(R, T, itemsize, budget)

    grid = (pl.cdiv(R, tr), pl.cdiv(T, tt))
    r_pad = grid[0] * tr
    if r_pad > R:
        # Pad the (tiny) scale so the in-kernel row slice of the resident copy
        # never reads past its VMEM allocation on the partial last row block.
        combined = jnp.pad(combined, ((0, r_pad - R), (0, 0)))

    out = pl.pallas_call(
        functools.partial(_affine_drop_path_kernel, tr=tr),
        out_shape=jax.ShapeDtypeStruct((R, T), x.dtype),
        grid_spec=pltpu.PrefetchScalarGridSpec(
            num_scalar_prefetch=0,
            grid=grid,
            in_specs=[
                # Whole combined scale resident in VMEM: constant block index
                # -> one DMA for the entire grid, sliced in-kernel per tile.
                pl.BlockSpec((r_pad, 1), lambda ri, ti: (0, 0)),
                pl.BlockSpec((tr, tt), lambda ri, ti: (ri, ti)),
            ],
            out_specs=pl.BlockSpec((tr, tt), lambda ri, ti: (ri, ti)),
        ),
        compiler_params=pltpu.CompilerParams(
            dimension_semantics=("parallel", "parallel"),
        ),
    )(combined, xr)

    return out.reshape(orig_shape)


class AffineDropPath:
    """Per-channel (zero-init) scale + stochastic depth -- JAX/Pallas version."""

    def __init__(self, num_dim, drop_prob=0.0, init_scale_value=1e-4):
        self.scale = jnp.full((1, num_dim, 1), init_scale_value, dtype=jnp.float32)
        self.drop_prob = drop_prob
        self.training = True

    def __call__(self, x, key=None):
        return affine_drop_path_pallas(x, self.scale, self.drop_prob,
                                       self.training, key=key)


if __name__ == "__main__":
    root = jax.random.PRNGKey(0)
    k_x, k_mask = jax.random.split(root)

    B, C, T = 2, 32, 128          # (batch, channels, sequence length)
    drop_prob = 0.3
    init_scale_value = 1e-4

    x = jax.random.normal(k_x, (B, C, T), dtype=jnp.float32)

    module = AffineDropPath(C, drop_prob=drop_prob, init_scale_value=init_scale_value)

    # --- training mode ---
    module.training = True
    out = jax.block_until_ready(module(x, key=k_mask))

    # Pure-JAX reference with the exact PyTorch op ordering and the same draws.
    keep_prob = 1.0 - drop_prob
    rand = jax.random.uniform(k_mask, (B,), dtype=jnp.float32)
    mask = jnp.floor(keep_prob + rand).reshape(B, 1, 1)
    scale_param = jnp.full((1, C, 1), init_scale_value, dtype=jnp.float32)
    ref = (scale_param * x) / keep_prob * mask
    assert jnp.allclose(out, ref, atol=1e-7, rtol=1e-5), "training-mode mismatch vs reference"

    # --- eval mode: DropPath is identity, but the affine channel scale stays ---
    module.training = False
    out_eval = jax.block_until_ready(module(x))
    ref_eval = scale_param * x
    assert jnp.allclose(out_eval, ref_eval, atol=1e-7, rtol=1e-5), "eval-mode mismatch vs reference"

    # --- odd shape + forced-small tile budget: exercises the cdiv grid,
    #     partial row/lane edge blocks, and the padded resident-scale slice ---
    B2, C2, T2 = 3, 20, 200
    x2 = jax.random.normal(jax.random.PRNGKey(1), (B2, C2, T2), dtype=jnp.float32)
    scale2 = jnp.full((1, C2, 1), 0.5, dtype=jnp.float32)
    out2 = jax.block_until_ready(
        affine_drop_path_pallas(x2, scale2, 0.0, False, block_bytes=4096))
    assert jnp.allclose(out2, 0.5 * x2, atol=1e-7, rtol=1e-5), "odd-shape mismatch vs reference"

    print("KERNEL_OK")
</pallas_src>

<mosaic_0001>
module attributes {stable_mosaic.version = 11 : i64} {
  func.func @_affine_drop_path_kernel(%arg0: i32, %arg1: i32, %arg2: memref<64x1xf32, #tpu.memory_space<vmem>>, %arg3: memref<64x128xf32, #tpu.memory_space<vmem>>, %arg4: memref<64x128xf32, #tpu.memory_space<vmem>>) attributes {dimension_semantics = [#tpu.dimension_semantics<parallel>, #tpu.dimension_semantics<parallel>], iteration_bounds = array<i64: 1, 1>, scalar_prefetch = 0 : i64, scratch_operands = 0 : i64, tpu.core_type = #tpu.core_type<tc>, window_params = [{pipeline_mode = #tpu.pipeline_mode<synchronous>, transform_indices = @transform_0, window_bounds = array<i64: 64, 1>}, {transform_indices = @transform_1, window_bounds = array<i64: 64, 128>}, {transform_indices = @transform_2, window_bounds = array<i64: 64, 128>}]} {
    %c64_i32 = arith.constant 64 : i32
    %0 = arith.muli %arg0, %c64_i32 : i32
    %1 = tpu.assume_multiple %0, 8 : i32
    %2 = arith.index_cast %1 : i32 to index
    %c0 = arith.constant 0 : index
    %3 = vector.load %arg2[%2, %c0] : memref<64x1xf32, #tpu.memory_space<vmem>>, vector<64x1xf32>
    %c0_0 = arith.constant 0 : index
    %c0_1 = arith.constant 0 : index
    %4 = vector.load %arg3[%c0_0, %c0_1] : memref<64x128xf32, #tpu.memory_space<vmem>>, vector<64x128xf32>
    %5 = vector.broadcast %3 : vector<64x1xf32> to vector<64x128xf32>
    %6 = arith.mulf %4, %5 : vector<64x128xf32>
    %c0_2 = arith.constant 0 : index
    %c0_3 = arith.constant 0 : index
    %7 = vector.load %arg4[%c0_2, %c0_3] : memref<64x128xf32, #tpu.memory_space<vmem>>, vector<64x128xf32>
    tpu.vector_store %arg4[%c0_2, %c0_3], %6 {strides = array<i32>} : memref<64x128xf32, #tpu.memory_space<vmem>>, vector<64x128xf32>,
    return
  }
  func.func @transform_0(%arg0: i32, %arg1: i32) -> (i32, i32) {
    %c0_i32 = arith.constant 0 : i32
    %c0_i32_0 = arith.constant 0 : i32
    %c0_i32_1 = arith.constant 0 : i32
    return %c0_i32, %c0_i32_0 : i32, i32
  }
  func.func @transform_1(%arg0: i32, %arg1: i32) -> (i32, i32) {
    %c0_i32 = arith.constant 0 : i32
    return %arg0, %arg1 : i32, i32
  }
  func.func @transform_2(%arg0: i32, %arg1: i32) -> (i32, i32) {
    %c0_i32 = arith.constant 0 : i32
    return %arg0, %arg1 : i32, i32
  }
}

</mosaic_0001>

<bundles_post_ra>
// kernel: tpu_custom_call.1
= control target key start
LH: loop header
LB: loop body
LE: loop exit
PB: predicated region body
PF: predicated region fallthrough
CT: control target
= control target key end

     0   :  { %v132_v2 = vmov 0   ;;  %s211_s0 = inlined_call_operand.vmem [shape: f32[64,1], index: 0, kind: input, shape index: {}]   ;;  %s212_s1 = inlined_call_operand.vmem [shape: f32[64,128], index: 1, kind: input, shape index: {}]   ;;  %s213_s2 = inlined_call_operand.hbm [shape: f32[64,128], index: 2, kind: output, shape index: {}]  }
   0x1   :  { %v16_v0 = vld [vmem:[%s211_s0 + $0x10] sm:$0xff]  ;;  %v14_v1 = vld [vmem:[%s211_s0] sm:$0xff]  ;;  %107 = vset.pattern.permute.xlu1 %v132_v2  ;;  %106 = vset.pattern.permute.xlu0 %v132_v2  ;;  %v17_v3 = vld [vmem:[%s211_s0 + $0x18] sm:$0xff] }
   0x2   :  { %42 = vperm.xlu1 %107, %v16_v0   ;;  %32 = vperm.xlu0 %106, %v14_v1   ;;  %v15_v4 = vld [vmem:[%s211_s0 + $0x8] sm:$0xff] }
   0x3   :  { %7 = vsyncpa [#allocation3], 0  ;;  %v19_v5 = vld [vmem:[%s211_s0 + $0x28] sm:$0xff]  ;;  %v18_v6 = vld [vmem:[%s211_s0 + $0x20] sm:$0xff]  ;;  %s133_s8 = smov [#allocation2]  }
   0x4   :  { %v21_v7 = vld [vmem:[%s211_s0 + $0x38] sm:$0xff]  ;;  %v20_v8 = vld [vmem:[%s211_s0 + $0x30] sm:$0xff]  ;;  %v22_v10 = vld [vmem:[%s212_s1] sm:$0xff]  ;;  %s91_s9 = sshll.u32 %s133_s8, 4  ;;  %s92_s9 = int_to_ptr.vmem [resolvable:$true] %s91_s9 }
   0x5   :  { %v24_v9 = vld [vmem:[%s212_s1 + $0x10] sm:$0xff]  ;;  %v25_v15 = vld [vmem:[%s212_s1 + $0x18] sm:$0xff]  ;;  %v23_v16 = vld [vmem:[%s212_s1 + $0x8] sm:$0xff]  ;;  %s108_s14 = scalar_lea.vmem %s92_s9, 1024  ;;  %p113_p1 = scmp.lt.s32.totalorder %s92_s9, %s92_s9 }
   0x6   :  { %47 = vperm.xlu1 %107, %v17_v3   ;;  %37 = vperm.xlu0 %106, %v15_v4   ;;  %v27_v21 = vld [vmem:[%s212_s1 + $0x28] sm:$0xff]  ;;  %v26_v22 = vld [vmem:[%s212_s1 + $0x20] sm:$0xff]  ;;  %v29_v27 = vld [vmem:[%s212_s1 + $0x38] sm:$0xff]  ;;  %p109_p0 = scmp.ne.s32.totalorder %s92_s9, %s108_s14  ;;  %p114_p2 = scmp.lt.s32.totalorder %s108_s14, %s108_s14 }
   0x7   :  { %v28_v28 = vld [vmem:[%s212_s1 + $0x30] sm:$0xff] }
   0x8   :  { %p115_p3 = por %p114_p2, %p113_p1 }
   0xa   :  { %57 = vperm.xlu1 %107, %v19_v5   ;;  %52 = vperm.xlu0 %106, %v18_v6   ;;  %p116_p4 = pnand %p115_p3, %p109_p0 }
   0xe   :  { %67 = vperm.xlu1 %107, %v21_v7   ;;  %62 = vperm.xlu0 %106, %v20_v8  }
  0x81   :  { %v43_v11 = vpop.permute.xlu1 %42  ;;  %v33_v12 = vpop.permute.xlu0 %32 }
  0x82   :  { %v72_v13 = vmul.f32 %v43_v11, %v24_v9  ;;  %v70_v14 = vmul.f32 %v33_v12, %v22_v10 }
  0x84   :  { %80 = vst [vmem:[#allocation2 + $0x10] sm:$0xff] %v72_v13  ;;  %78 = vst [vmem:[#allocation2] sm:$0xff] %v70_v14 }
  0x85   :  { %v48_v17 = vpop.permute.xlu1 %47  ;;  %v38_v18 = vpop.permute.xlu0 %37 }
  0x86   :  { %v73_v19 = vmul.f32 %v48_v17, %v25_v15  ;;  %v71_v20 = vmul.f32 %v38_v18, %v23_v16 }
  0x88   :  { %81 = vst [vmem:[#allocation2 + $0x18] sm:$0xff] %v73_v19  ;;  %79 = vst [vmem:[#allocation2 + $0x8] sm:$0xff] %v71_v20 }
  0x89   :  { %v58_v23 = vpop.permute.xlu1 %57  ;;  %v53_v24 = vpop.permute.xlu0 %52 }
  0x8a   :  { %v75_v25 = vmul.f32 %v58_v23, %v27_v21  ;;  %v74_v26 = vmul.f32 %v53_v24, %v26_v22 }
  0x8c   :  { %83 = vst [vmem:[#allocation2 + $0x28] sm:$0xff] %v75_v25  ;;  %82 = vst [vmem:[#allocation2 + $0x20] sm:$0xff] %v74_v26 }
  0x8d   :  { %v68_v29 = vpop.permute.xlu1 %67  ;;  %v63_v30 = vpop.permute.xlu0 %62 }
  0x8e   :  { %v77_v31 = vmul.f32 %v68_v29, %v29_v27  ;;  %v76_v32 = vmul.f32 %v63_v30, %v28_v28 }
  0x90   :  { %85 = vst [vmem:[#allocation2 + $0x38] sm:$0xff] %v77_v31  ;;  %84 = vst [vmem:[#allocation2 + $0x30] sm:$0xff] %v76_v32 }
  0x91   :  { %119 = shalt.err (!%p116_p4)
}
  0x92   :  { %s120_s1 = scalar_lea.hbm %s213_s2, 1024 }
  0x93   :  { %p121_p5 = scmp.ne.s32.totalorder %s213_s2, %s120_s1  ;;  %p124_p6 = scmp.lt.u32.totalorder %s120_s1, %s213_s2 }
  0x95   :  { %p126_p7 = pnand %p124_p6, %p121_p5 }
  0x97   :  { %129 = shalt.err (!%p126_p7)
}
  0x98   :  { %s134_s21 = smov 128   ;;  %s135_s22 = smov 8  }
  0x99   :  { %97 = dma.vmem_to_hbm [thread:$0]  %s92_s9, 1024, %s213_s2, [#allocation3], %s134_s21, %s134_s21, %s135_s22  }
  0x9a   :  { %130 = dma.done.wait [#allocation3], 1024  }
  0x9b   :  { %131 = vsyncadd [#allocation3], 4294966272 }
  0x9c   :  { %101 = vsyncpa [#allocation3], 1 }

</bundles_post_ra>
